<compile_context>
chip_gen: v7x
topology: tpu7x:2x2x1
jax: 0.10.0
libtpu: 0.0.40
codegen_flags: <defaults>
</compile_context>

<pallas_src>
import jax
import jax.numpy as jnp
from jax.experimental import pallas as pl
from jax.experimental.pallas import tpu as pltpu


def _make_kernel(B, b_tile, steps_per_core, C, Cb):
    inv_C = 1.0 / float(C)
    inv_Cb = 1.0 / float(Cb)

    def kernel(iv_ref, ctx_ref, biv_ref, bov_ref, out_ref):
        p = pl.program_id(0)          # parallel (per-core) axis
        t = pl.program_id(1)          # arbitrary (accumulation) axis

        @pl.when(t == 0)
        def _():
            out_ref[...] = jnp.zeros_like(out_ref)

        iv = iv_ref[...]                                   # (b_tile, D)
        biv = biv_ref[...]                                 # (b_tile, D)

        # Fold the +/- sign into two sliced sublane reduces over the fused
        # context stream, then one lane reduce against iv.
        pos = jnp.sum(ctx_ref[:, :C, :], axis=1)           # (b_tile, D)
        neg = jnp.sum(ctx_ref[:, C:, :], axis=1)           # (b_tile, D)
        pn = jnp.sum(iv * (pos - neg), axis=-1, keepdims=True)      # (b_tile, 1)

        bsum = jnp.sum(bov_ref[...], axis=1)                         # (b_tile, D)
        bmean = jnp.sum(biv * bsum, axis=-1, keepdims=True) * inv_Cb  # (b_tile, 1)

        # per-row contribution: oloss + nloss - 0.5 * base_loss^2
        contrib = pn * inv_C - 0.5 * bmean * bmean                    # (b_tile, 1)

        # Ragged-tail mask (padded batch rows contribute zero).
        tile_idx = p * steps_per_core + t
        row = tile_idx * b_tile + jax.lax.broadcasted_iota(
            jnp.int32, (b_tile, 1), 0)
        contrib = jnp.where(row < B, contrib, 0.0)

        # Elementwise accumulate into a resident per-core (b_tile, 1) block;
        # the cross-row reduce and -1/B scale happen once in the wrapper.
        out_ref[...] += contrib

    return kernel


def modularity_triplet_loss(emb_i, emb_o, iwords, owords, nwords,
                            base_iwords, base_owords, n_neg, *,
                            b_tile=None, num_cores=2,
                            vmem_budget_bytes=16 * 1024 * 1024):
    """Forward pass of ModularityTripletLoss (Pallas TPU kernel)."""
    B = int(iwords.shape[0])
    C = int(owords.shape[1])
    Cb = int(base_owords.shape[1])
    D = int(emb_i.shape[1])
    K = C * (1 + n_neg)
    assert nwords.shape == (B, C * n_neg), "nwords must be (B, C * n_neg)"
    assert emb_o.shape[1] == D

    f32 = jnp.float32
    emb_i = emb_i.astype(f32)
    emb_o = emb_o.astype(f32)

    # ---- choose a sublane-aligned batch tile that fits the VMEM budget ----
    bytes_per_row = (K + Cb + 2) * D * 4            # f32 rows per batch element
    if b_tile is None:
        b_tile = vmem_budget_bytes // (2 * bytes_per_row)   # double-buffered inputs
    b_tile = int(max(8, min(1024, (int(b_tile) // 8) * 8)))
    b_round8 = ((B + 7) // 8) * 8
    b_tile = min(b_tile, b_round8)                   # don't over-allocate tiny B

    n_tiles = (B + b_tile - 1) // b_tile
    n_par = int(max(1, min(int(num_cores), n_tiles)))   # megacore split (v7x)
    steps = (n_tiles + n_par - 1) // n_par
    B_pad = n_par * steps * b_tile

    # ---- pad indices (tail rows masked in-kernel) and gather rows in XLA ----
    def pad_b(x):
        pad = B_pad - B
        if pad == 0:
            return x
        return jnp.pad(x, ((0, pad),) + ((0, 0),) * (x.ndim - 1))

    iwords = pad_b(iwords.astype(jnp.int32))
    base_iwords = pad_b(base_iwords.astype(jnp.int32))
    ow_cat = pad_b(jnp.concatenate([owords, nwords], axis=1).astype(jnp.int32))
    base_owords = pad_b(base_owords.astype(jnp.int32))

    iv = emb_i[iwords]             # (B_pad, D)
    biv = emb_i[base_iwords]       # (B_pad, D)
    ctx = emb_o[ow_cat]            # (B_pad, K, D)   fused positive+negative rows
    bov = emb_o[base_owords]       # (B_pad, Cb, D)

    kernel = _make_kernel(B, b_tile, steps, C, Cb)

    def row_map2(p, t):
        return (p * steps + t, 0)

    def row_map3(p, t):
        return (p * steps + t, 0, 0)

    # Scoped-VMEM limit with headroom; keep the budget <= ~24 MiB on v7x
    # (64 MiB physical VMEM) and raise it for bigger tiles on v5e/v6e.
    vmem_limit = int(min(96 * 1024 * 1024,
                         max(32 * 1024 * 1024, 3 * b_tile * bytes_per_row)))

    partial = pl.pallas_call(
        kernel,
        out_shape=jax.ShapeDtypeStruct((n_par * b_tile, 1), f32),
        grid=(n_par, steps),
        in_specs=[
            pl.BlockSpec((b_tile, D), row_map2),        # ivectors
            pl.BlockSpec((b_tile, K, D), row_map3),     # fused o/n context rows
            pl.BlockSpec((b_tile, D), row_map2),        # base ivectors
            pl.BlockSpec((b_tile, Cb, D), row_map3),    # base ovectors
        ],
        out_specs=pl.BlockSpec((b_tile, 1), lambda p, t: (p, 0)),
        compiler_params=pltpu.CompilerParams(
            dimension_semantics=("parallel", "arbitrary"),
            vmem_limit_bytes=vmem_limit,
        ),
    )(iv, ctx, biv, bov)

    return -jnp.sum(partial) / B


def _reference_loss(emb_i, emb_o, iwords, owords, nwords,
                    base_iwords, base_owords, n_neg):
    """Pure-JAX mirror of the PyTorch forward (for a sanity check)."""
    iv = emb_i[iwords][:, :, None]                    # (B, D, 1)
    ov = emb_o[owords]                                # (B, C, D)
    nv = -emb_o[nwords]                               # (B, C*n_neg, D)
    biv = emb_i[base_iwords][:, :, None]              # (B, D, 1)
    bov = emb_o[base_owords]                          # (B, Cb, D)

    oloss = jnp.squeeze(jnp.matmul(ov, iv), -1).mean(axis=1)
    nloss = (jnp.squeeze(jnp.matmul(nv, iv), -1)
             .reshape(-1, owords.shape[1], n_neg).sum(axis=2).mean(axis=1))
    base_loss = jnp.squeeze(jnp.matmul(bov, biv), -1).mean(axis=1)
    return -(oloss + nloss - 0.5 * base_loss ** 2).mean()


if __name__ == "__main__":
    # Small, deterministic synthetic setup (lane-dense D=128; B chosen so the
    # ragged-tail mask, the multi-tile accumulation axis and the 2-way
    # parallel split are all exercised).
    VOCAB, D = 64, 128
    B, C, N_NEG, CB = 20, 8, 5, 8

    key = jax.random.PRNGKey(0)
    k_ei, k_eo, k_i, k_o, k_n, k_bi, k_bo = jax.random.split(key, 7)

    emb_i = jax.random.normal(k_ei, (VOCAB, D), dtype=jnp.float32)
    emb_o = jax.random.normal(k_eo, (VOCAB, D), dtype=jnp.float32)

    iwords = jax.random.randint(k_i, (B,), 0, VOCAB, dtype=jnp.int32)
    owords = jax.random.randint(k_o, (B, C), 0, VOCAB, dtype=jnp.int32)
    nwords = jax.random.randint(k_n, (B, C * N_NEG), 0, VOCAB, dtype=jnp.int32)
    base_iwords = jax.random.randint(k_bi, (B,), 0, VOCAB, dtype=jnp.int32)
    base_owords = jax.random.randint(k_bo, (B, CB), 0, VOCAB, dtype=jnp.int32)

    loss = modularity_triplet_loss(emb_i, emb_o, iwords, owords, nwords,
                                   base_iwords, base_owords, N_NEG,
                                   b_tile=8, num_cores=2)
    loss = jax.block_until_ready(loss)

    ref = jax.block_until_ready(
        _reference_loss(emb_i, emb_o, iwords, owords, nwords,
                        base_iwords, base_owords, N_NEG))

    assert jnp.isfinite(loss), "kernel produced non-finite loss"
    assert jnp.allclose(loss, ref, rtol=1e-4, atol=1e-4), (loss, ref)
    print("KERNEL_OK")
</pallas_src>

<mosaic_0001>
module attributes {stable_mosaic.version = 11 : i64} {
  func.func @kernel(%arg0: i32, %arg1: i32, %arg2: memref<8x128xf32, #tpu.memory_space<vmem>>, %arg3: memref<8x48x128xf32, #tpu.memory_space<vmem>>, %arg4: memref<8x128xf32, #tpu.memory_space<vmem>>, %arg5: memref<8x8x128xf32, #tpu.memory_space<vmem>>, %arg6: memref<8x1xf32, #tpu.memory_space<vmem>>) attributes {dimension_semantics = [#tpu.dimension_semantics<parallel>, #tpu.dimension_semantics<arbitrary>], iteration_bounds = array<i64: 2, 2>, scalar_prefetch = 0 : i64, scratch_operands = 0 : i64, tpu.core_type = #tpu.core_type<tc>, window_params = [{transform_indices = @transform_0, window_bounds = array<i64: 8, 128>}, {transform_indices = @transform_1, window_bounds = array<i64: 8, 48, 128>}, {transform_indices = @transform_2, window_bounds = array<i64: 8, 128>}, {transform_indices = @transform_3, window_bounds = array<i64: 8, 8, 128>}, {transform_indices = @transform_4, window_bounds = array<i64: 8, 1>}]} {
    %c0_i32 = arith.constant 0 : i32
    %0 = arith.cmpi eq, %arg1, %c0_i32 : i32
    %1 = arith.extui %0 : i1 to i32
    %c0_i32_0 = arith.constant 0 : i32
    %2 = arith.cmpi ne, %1, %c0_i32_0 : i32
    scf.if %2 {
      %cst_24 = arith.constant 0.000000e+00 : f32
      %39 = vector.broadcast %cst_24 : f32 to vector<8x1xf32>
      %c0_25 = arith.constant 0 : index
      %c0_26 = arith.constant 0 : index
      %40 = vector.load %arg6[%c0_25, %c0_26] : memref<8x1xf32, #tpu.memory_space<vmem>>, vector<8x1xf32>
      tpu.vector_store %arg6[%c0_25, %c0_26], %39 {strides = array<i32>} : memref<8x1xf32, #tpu.memory_space<vmem>>, vector<8x1xf32>,
    } else {
    }
    %c0 = arith.constant 0 : index
    %c0_1 = arith.constant 0 : index
    %3 = vector.load %arg2[%c0, %c0_1] : memref<8x128xf32, #tpu.memory_space<vmem>>, vector<8x128xf32>
    %c0_2 = arith.constant 0 : index
    %c0_3 = arith.constant 0 : index
    %4 = vector.load %arg4[%c0_2, %c0_3] : memref<8x128xf32, #tpu.memory_space<vmem>>, vector<8x128xf32>
    %c0_4 = arith.constant 0 : index
    %c0_5 = arith.constant 0 : index
    %c0_6 = arith.constant 0 : index
    %5 = vector.load %arg3[%c0_4, %c0_5, %c0_6] : memref<8x48x128xf32, #tpu.memory_space<vmem>>, vector<8x8x128xf32>
    %cst = arith.constant dense<0.000000e+00> : vector<8x128xf32>
    %6 = vector.multi_reduction <add>, %5, %cst [1] : vector<8x8x128xf32> to vector<8x128xf32>
    %c0_7 = arith.constant 0 : index
    %c8 = arith.constant 8 : index
    %c0_8 = arith.constant 0 : index
    %7 = vector.load %arg3[%c0_7, %c8, %c0_8] : memref<8x48x128xf32, #tpu.memory_space<vmem>>, vector<8x40x128xf32>
    %cst_9 = arith.constant dense<0.000000e+00> : vector<8x128xf32>
    %8 = vector.multi_reduction <add>, %7, %cst_9 [1] : vector<8x40x128xf32> to vector<8x128xf32>
    %9 = arith.subf %6, %8 : vector<8x128xf32>
    %10 = arith.mulf %3, %9 : vector<8x128xf32>
    %cst_10 = arith.constant dense<0.000000e+00> : vector<8xf32>
    %11 = vector.multi_reduction <add>, %10, %cst_10 [1] : vector<8x128xf32> to vector<8xf32>
    %12 = vector.shape_cast %11 : vector<8xf32> to vector<8x1xf32>
    %c0_11 = arith.constant 0 : index
    %c0_12 = arith.constant 0 : index
    %c0_13 = arith.constant 0 : index
    %13 = vector.load %arg5[%c0_11, %c0_12, %c0_13] : memref<8x8x128xf32, #tpu.memory_space<vmem>>, vector<8x8x128xf32>
    %cst_14 = arith.constant dense<0.000000e+00> : vector<8x128xf32>
    %14 = vector.multi_reduction <add>, %13, %cst_14 [1] : vector<8x8x128xf32> to vector<8x128xf32>
    %15 = arith.mulf %4, %14 : vector<8x128xf32>
    %cst_15 = arith.constant dense<0.000000e+00> : vector<8xf32>
    %16 = vector.multi_reduction <add>, %15, %cst_15 [1] : vector<8x128xf32> to vector<8xf32>
    %17 = vector.shape_cast %16 : vector<8xf32> to vector<8x1xf32>
    %cst_16 = arith.constant 1.250000e-01 : f32
    %18 = vector.broadcast %cst_16 : f32 to vector<8x1xf32>
    %19 = arith.mulf %17, %18 : vector<8x1xf32>
    %cst_17 = arith.constant 1.250000e-01 : f32
    %20 = vector.broadcast %cst_17 : f32 to vector<8x1xf32>
    %21 = arith.mulf %12, %20 : vector<8x1xf32>
    %cst_18 = arith.constant 5.000000e-01 : f32
    %22 = vector.broadcast %cst_18 : f32 to vector<8x1xf32>
    %23 = arith.mulf %22, %19 : vector<8x1xf32>
    %24 = arith.mulf %23, %19 : vector<8x1xf32>
    %25 = arith.subf %21, %24 : vector<8x1xf32>
    %c2_i32 = arith.constant 2 : i32
    %26 = arith.muli %arg0, %c2_i32 : i32
    %27 = arith.addi %26, %arg1 : i32
    %c8_i32 = arith.constant 8 : i32
    %28 = arith.muli %27, %c8_i32 : i32
    %29 = tpu.iota {dimensions = array<i32: 0>} : vector<8x1xi32>
    %30 = vector.broadcast %28 : i32 to vector<8x1xi32>
    %31 = arith.addi %30, %29 : vector<8x1xi32>
    %c20_i32 = arith.constant 20 : i32
    %32 = vector.broadcast %c20_i32 : i32 to vector<8x1xi32>
    %33 = arith.cmpi slt, %31, %32 : vector<8x1xi32>
    %cst_19 = arith.constant 0.000000e+00 : f32
    %34 = vector.broadcast %cst_19 : f32 to vector<8x1xf32>
    %35 = arith.select %33, %25, %34 : vector<8x1xi1>, vector<8x1xf32>
    %c0_20 = arith.constant 0 : index
    %c0_21 = arith.constant 0 : index
    %36 = vector.load %arg6[%c0_20, %c0_21] : memref<8x1xf32, #tpu.memory_space<vmem>>, vector<8x1xf32>
    %37 = arith.addf %36, %35 : vector<8x1xf32>
    %c0_22 = arith.constant 0 : index
    %c0_23 = arith.constant 0 : index
    %38 = vector.load %arg6[%c0_22, %c0_23] : memref<8x1xf32, #tpu.memory_space<vmem>>, vector<8x1xf32>
    tpu.vector_store %arg6[%c0_22, %c0_23], %37 {strides = array<i32>} : memref<8x1xf32, #tpu.memory_space<vmem>>, vector<8x1xf32>,
    return
  }
  func.func @transform_0(%arg0: i32, %arg1: i32) -> (i32, i32) {
    %c2_i32 = arith.constant 2 : i32
    %0 = arith.muli %arg0, %c2_i32 : i32
    %1 = arith.addi %0, %arg1 : i32
    %c0_i32 = arith.constant 0 : i32
    %c0_i32_0 = arith.constant 0 : i32
    return %1, %c0_i32 : i32, i32
  }
  func.func @transform_1(%arg0: i32, %arg1: i32) -> (i32, i32, i32) {
    %c2_i32 = arith.constant 2 : i32
    %0 = arith.muli %arg0, %c2_i32 : i32
    %1 = arith.addi %0, %arg1 : i32
    %c0_i32 = arith.constant 0 : i32
    %c0_i32_0 = arith.constant 0 : i32
    %c0_i32_1 = arith.constant 0 : i32
    return %1, %c0_i32, %c0_i32_0 : i32, i32, i32
  }
  func.func @transform_2(%arg0: i32, %arg1: i32) -> (i32, i32) {
    %c2_i32 = arith.constant 2 : i32
    %0 = arith.muli %arg0, %c2_i32 : i32
    %1 = arith.addi %0, %arg1 : i32
    %c0_i32 = arith.constant 0 : i32
    %c0_i32_0 = arith.constant 0 : i32
    return %1, %c0_i32 : i32, i32
  }
  func.func @transform_3(%arg0: i32, %arg1: i32) -> (i32, i32, i32) {
    %c2_i32 = arith.constant 2 : i32
    %0 = arith.muli %arg0, %c2_i32 : i32
    %1 = arith.addi %0, %arg1 : i32
    %c0_i32 = arith.constant 0 : i32
    %c0_i32_0 = arith.constant 0 : i32
    %c0_i32_1 = arith.constant 0 : i32
    return %1, %c0_i32, %c0_i32_0 : i32, i32, i32
  }
  func.func @transform_4(%arg0: i32, %arg1: i32) -> (i32, i32) {
    %c0_i32 = arith.constant 0 : i32
    %c0_i32_0 = arith.constant 0 : i32
    return %arg0, %c0_i32 : i32, i32
  }
}

</mosaic_0001>

<bundles_post_ra>
// kernel: tpu_custom_call.1
= control target key start
LH: loop header
LB: loop body
LE: loop exit
PB: predicated region body
PF: predicated region fallthrough
CT: control target
= control target key end

     0   :  { %s1564_s0 = inlined_call_operand.hbm [shape: f32[32,128], index: 0, kind: input, shape index: {}]   ;;  %s1565_s1 = inlined_call_operand.hbm [shape: f32[32,48,128], index: 1, kind: input, shape index: {}]   ;;  %s1566_s2 = inlined_call_operand.hbm [shape: f32[32,128], index: 2, kind: input, shape index: {}]   ;;  %s1567_s3 = inlined_call_operand.hbm [shape: f32[32,8,128], index: 3, kind: input, shape index: {}]   ;;  %s1568_s4 = inlined_call_operand.vmem [shape: f32[16,1], index: 4, kind: output, shape index: {}]  }
   0x1   :  { %1579 = sst [smem:[#allocation14_spill]] %s1565_s1 }
   0x2   :  { %9 = vsyncpa [#allocation3], 0 }
   0x3   :  { %11 = vsyncpa [#allocation3 + $0x1], 0 }
   0x4   :  { %12 = vsyncpa [#allocation5], 0 }
   0x5   :  { %14 = vsyncpa [#allocation5 + $0x1], 0 }
   0x6   :  { %15 = vsyncpa [#allocation8], 0 }
   0x7   :  { %17 = vsyncpa [#allocation8 + $0x1], 0  ;;  %s1192_s15 = smov 0   ;;  %s1194_s16 = smov 0  }
   0x8   :  { %s1196_s17 = smov 0   ;;  %s1198_s18 = smov 0  }
   0x9   :  { %s1200_s19 = smov 0   ;;  %s1202_s20 = smov 0  }
   0xa   :  { %s1204_s21 = smov 0   ;;  %s1206_s22 = smov 0  }
   0xb LB: > { %s1570_s23 = sadd.s32 4294967295, %s1158_s22   ;;  %s32_s24 = sadd.s32 1, %s1150_s20  ;;  %s1158_s22 = sphi %s1206_s22, %s23_s22   ;;  %s1154_s21 = sphi %s1204_s21, %s1605_s21   ;;  %s1150_s20 = sphi %s1202_s20, %s1604_s20   ;;  %s1146_s19 = sphi %s1200_s19, %s1603_s19   ;;  %s1142_s18 = sphi %s1198_s18, %s1602_s18   ;;  %s1138_s17 = sphi %s1196_s17, %s1601_s17   ;;  %s1134_s16 = sphi %s1194_s16, %s1600_s16   ;;  %s1130_s15 = sphi %s1192_s15, %s1599_s15  }
   0xc   : > { %p33_p0 = scmp.ge.s32.totalorder %s32_s24, 2  ;;  %s35_s25 = sadd.s32 1, %s1154_s21 }
   0xd   : > { %s837_s26 = sshll.u32 %s1154_s21, 1  ;;  %s46_s27 = sadd.s32 1, %s1138_s17 }
   0xe   : > { %s1607_s24 = smov (%p33_p0, %s32_s24), 0  ;;  %s1609_s25 = smov (!%p33_p0, %s35_s25), %s1154_s21 }
   0xf   : > { %1580 = sst [smem:[#allocation12_spill]] %s1607_s24  ;;  %s1239_s28 = sadd.s32 %s1150_s20, %s837_s26 }
  0x10   : > { %p53_p1 = scmp.ne.s32.totalorder %s1138_s17, %s1134_s16  ;;  %p37_p2 = scmp.ge.s32.totalorder %s1609_s25, 2 }
  0x11   : > { %p54_p3 = scmp.eq.s32.totalorder %s1158_s22, 0  ;;  %p59_p4 = scmp.ne.s32.totalorder %s1134_s16, %s1130_s15 }
  0x12   : > { %p60_p5 = scmp.eq.s32.totalorder %s1570_s23, 0  ;;  %s1611_s25 = smov (%p37_p2, %s1609_s25), 0 }
  0x13   : > { %1581 = sst [smem:[#allocation13_spill]] %s1611_s25  ;;  %p55_p6 = por %p54_p3, %p53_p1 }
  0x14   : > { %p1249_p7 = por %p60_p5, %p59_p4  ;;  %s838_s30 = sshll.u32 %s1611_s25, 1 }
  0x15   : > { %s42_s5 = sadd.s32 %s838_s30, %s1607_s24  ;;  %p896_p8 = scmp.lt.s32.totalorder %s1158_s22, 4 }
  0x16   : > { %s1582_s29 = scalar_select %p1249_p7, 1, 0 }
  0x17   : > { %s43_s6 = ssub.s32 %s1239_s28, %s42_s5  ;;  %s1258_s7 = sand.u32 1, %s1138_s17  }
  0x18   : > { %p44_p9 = scmp.eq.s32.totalorder %s43_s6, 0  ;;  %p1260_p10 = pnand %p896_p8, %p55_p6 }
  0x19   : > { %s219_s9 = sand.u32 1, %s1158_s22   ;;  %s872_s10 = smul.u32 384, %s1258_s7 }
  0x1a   : > { %s1583_s8 = scalar_select %p1260_p10, 1, 0 }
  0x1b   : > { %s1267_s11 = scalar_select %p44_p9, %s1138_s17, %s46_s27  }
  0x1c   : > { %s873_s12 = smul.u32 6144, %s1239_s28  ;;  %s223_s13 = scalar_lea.vmem [#allocation4], %s872_s10 }
  0x1d   : > { %s233_s14 = sshll.u32 %s223_s13, 4  ;;  %s1584_s1 = sld [smem:[#allocation14_spill]]  ;;  %s1275_s14 = int_to_ptr.vmem [resolvable:$true] %s233_s14 }
  0x1e   : > { %s1278_s5 = scalar_lea.sflag [#allocation5], %s219_s9  ;;  %p1284_p13 = pneg %p1260_p10 }
  0x23   : > { %s1273_s30 = scalar_lea.hbm %s1584_s1, %s873_s12  ;;  %s969_s13 = scalar_lea.hbm %s1584_s1, 24576 }
  0x24   : > { %s964_s6 = scalar_lea.hbm %s1273_s30, 6144  ;;  %p970_p2 = scmp.lt.u32.totalorder %s1273_s30, %s1584_s1 }
  0x25   : > { %p965_p12 = scmp.ne.s32.totalorder %s1273_s30, %s964_s6  ;;  %p971_p3 = scmp.lt.u32.totalorder %s969_s13, %s964_s6 }
  0x26   : > { %p973_p5 = scmp.lt.u32.totalorder %s964_s6, %s1273_s30 }
  0x27   : > { %p967_p0 = pnand %p1284_p13, %p965_p12  ;;  %p972_p4 = por %p971_p3, %p970_p2 }
  0x29   : > { %p968_p1 = pneg %p967_p0  ;;  %p974_p6 = por %p973_p5, %p972_p4 }
  0x2b   : > { %p975_p8 = pnand %p974_p6, %p968_p1 }
  0x2d   : > { %978 = shalt.err (!%p975_p8)
}
  0x2e   : > { %s979_s9 = scalar_lea.vmem %s1275_s14, 6144  ;;  %s1160_s10 = smov [#allocation4]  }
  0x2f   : > { %p980_p9 = scmp.ne.s32.totalorder %s1275_s14, %s979_s9  ;;  %s984_s12 = sshll.u32 %s1160_s10, 4  ;;  %s985_s12 = int_to_ptr.vmem [resolvable:$false] %s984_s12 }
  0x30   : > { %s986_s15 = scalar_lea.vmem %s985_s12, 12288  ;;  %p987_p11 = scmp.lt.s32.totalorder %s1275_s14, %s985_s12 }
  0x31   : > { %p982_p12 = pnand %p980_p9, %p1284_p13  ;;  %p988_p7 = scmp.lt.s32.totalorder %s986_s15, %s979_s9 }
  0x33   : > { %p983_p0 = pneg %p982_p12  ;;  %p989_p2 = por %p988_p7, %p987_p11 }
  0x35   : > { %p990_p3 = pnand %p989_p2, %p983_p0 }
  0x37   : > { %993 = shalt.err (!%p990_p3)
}
  0x38   : > { %s1571_s6 = smov 128   ;;  %s1572_s13 = smov 8  }
  0x39   : > { %889 = dma.hbm_to_vmem [thread:$0]  (!%p1260_p10), %s1273_s30, 6144, %s1275_s14, %s1278_s5, %s1571_s6, %s1571_s6, %s1572_s13  }
  0x3a   : > { %p284_p7 = scmp.lt.s32.totalorder %s1158_s22, 5  ;;  %p1586_p11 = scmp.ge.s32.totalorder %s1158_s22, 1 }
  0x3b   : > { %s1575_s9 = sshll.u32 %s1258_s7, 3  ;;  %s1574_s10 = sshll.u32 %s1239_s28, 7 }
  0x3c   : > { %p1314_p1 = pnand %p1586_p11, %p284_p7  ;;  %s1325_s23 = scalar_lea.hbm %s1564_s0, %s1574_s10 }
  0x3d   : > { %s203_s14 = scalar_lea.vmem [#allocation2], %s1575_s9  ;;  %s200_s6 = scalar_lea.sflag [#allocation3], %s1258_s7 }
  0x3e   : > { %s1587_s26 = scalar_select %p1314_p1, 1, 0 }
  0x3f   : > { %s212_s30 = sshll.u32 %s203_s14, 4  ;;  %s994_s13 = scalar_lea.hbm %s1325_s23, 128  ;;  %s213_s30 = int_to_ptr.vmem [resolvable:$true] %s212_s30 }
  0x40   : > { %p995_p4 = scmp.ne.s32.totalorder %s1325_s23, %s994_s13  ;;  %s999_s12 = scalar_lea.hbm %s1564_s0, 512 }
  0x41   : > { %p1000_p8 = scmp.lt.u32.totalorder %s1325_s23, %s1564_s0  ;;  %p1001_p9 = scmp.lt.u32.totalorder %s999_s12, %s994_s13 }
  0x42   : > { %p997_p5 = pnand %p995_p4, %p1284_p13  ;;  %p1003_p0 = scmp.lt.u32.totalorder %s994_s13, %s1325_s23 }
  0x43   : > { %p1002_p12 = por %p1001_p9, %p1000_p8 }
  0x44   : > { %p998_p6 = pneg %p997_p5 }
  0x45   : > { %p1004_p2 = por %p1003_p0, %p1002_p12 }
  0x47   : > { %p1005_p3 = pnand %p1004_p2, %p998_p6 }
  0x49   : > { %1008 = shalt.err (!%p1005_p3)
}
  0x4a   : > { %s1009_s14 = scalar_lea.vmem %s213_s30, 128  ;;  %s1163_s9 = smov [#allocation2]  }
  0x4b   : > { %p1010_p7 = scmp.ne.s32.totalorder %s213_s30, %s1009_s14  ;;  %s1014_s24 = sshll.u32 %s1163_s9, 4  ;;  %s1015_s24 = int_to_ptr.vmem [resolvable:$false] %s1014_s24 }
  0x4c   : > { %s1016_s1 = scalar_lea.vmem %s1015_s24, 256  ;;  %p1017_p5 = scmp.lt.s32.totalorder %s213_s30, %s1015_s24 }
  0x4d   : > { %p1012_p11 = pnand %p1010_p7, %p1284_p13  ;;  %p1018_p1 = scmp.lt.s32.totalorder %s1016_s1, %s1009_s14 }
  0x4f   : > { %p1013_p4 = pneg %p1012_p11  ;;  %p1019_p10 = por %p1018_p1, %p1017_p5 }
  0x51   : > { %p1020_p8 = pnand %p1019_p10, %p1013_p4 }
  0x53   : > { %1023 = shalt.err (!%p1020_p8)
}
  0x54   : > { %p1588_p9 = scmp.ne.s32.totalorder %s1583_s8, 0  ;;  %s1589_s25 = sshll.u32 %s1239_s28, 7 }
  0x55   : > { %s1352_s12 = scalar_lea.hbm %s1566_s2, %s1589_s25  ;;  %s1590_s9 = sshll.u32 %s1258_s7, 3 }
  0x56   : > { %886 = dma.hbm_to_vmem [thread:$0]  (!%p1588_p9), %s1325_s23, 128, %s213_s30, %s200_s6  }
  0x57   : > { %s247_s24 = scalar_lea.vmem [#allocation6], %s1590_s9  ;;  %s1024_s14 = scalar_lea.hbm %s1352_s12, 128 }
  0x58   : > { %s256_s15 = sshll.u32 %s247_s24, 4  ;;  %p1025_p10 = scmp.ne.s32.totalorder %s1352_s12, %s1024_s14  ;;  %s257_s15 = int_to_ptr.vmem [resolvable:$true] %s256_s15 }
  0x59   : > { %s1029_s30 = scalar_lea.hbm %s1566_s2, 512  ;;  %p1030_p12 = scmp.lt.u32.totalorder %s1352_s12, %s1566_s2 }
  0x5a   : > { %p1027_p1 = pnand %p1025_p10, %p1284_p13  ;;  %p1031_p0 = scmp.lt.u32.totalorder %s1029_s30, %s1024_s14 }
  0x5b   : > { %p1033_p3 = scmp.lt.u32.totalorder %s1024_s14, %s1352_s12 }
  0x5c   : > { %p1028_p6 = pneg %p1027_p1  ;;  %p1032_p2 = por %p1031_p0, %p1030_p12 }
  0x5e   : > { %p1034_p7 = por %p1033_p3, %p1032_p2 }
  0x60   : > { %p1035_p11 = pnand %p1034_p7, %p1028_p6 }
  0x62   : > { %1038 = shalt.err (!%p1035_p11)
}
  0x63   : > { %s1039_s13 = scalar_lea.vmem %s257_s15, 128  ;;  %s1164_s10 = smov [#allocation6]  }
  0x64   : > { %p1040_p4 = scmp.ne.s32.totalorder %s257_s15, %s1039_s13  ;;  %s1044_s9 = sshll.u32 %s1164_s10, 4  ;;  %s1045_s9 = int_to_ptr.vmem [resolvable:$false] %s1044_s9 }
  0x65   : > { %s1046_s24 = scalar_lea.vmem %s1045_s9, 256  ;;  %p1047_p10 = scmp.lt.s32.totalorder %s257_s15, %s1045_s9 }
  0x66   : > { %p1042_p5 = pnand %p1040_p4, %p1284_p13  ;;  %p1048_p1 = scmp.lt.s32.totalorder %s1046_s24, %s1039_s13 }
  0x68   : > { %p1043_p8 = pneg %p1042_p5  ;;  %p1049_p9 = por %p1048_p1, %p1047_p10 }
  0x6a   : > { %p1050_p0 = pnand %p1049_p9, %p1043_p8 }
  0x6c   : > { %1053 = shalt.err (!%p1050_p0)
}
  0x6d   : > { %p1591_p12 = scmp.ne.s32.totalorder %s1583_s8, 0  ;;  %s857_s14 = sshll.u32 %s1258_s7, 6 }
  0x6e   : > { %s871_s23 = sshll.u32 %s1239_s28, 10  ;;  %s267_s25 = scalar_lea.vmem [#allocation7], %s857_s14 }
  0x6f   : > { %892 = dma.hbm_to_vmem [thread:$0]  (!%p1591_p12), %s1352_s12, 128, %s257_s15, %s1278_s5  }
  0x70   : > { %s1379_s1 = scalar_lea.hbm %s1567_s3, %s871_s23  ;;  %s276_s13 = sshll.u32 %s267_s25, 4  ;;  %s1381_s13 = int_to_ptr.vmem [resolvable:$true] %s276_s13 }
  0x71   : > { %s264_s10 = scalar_lea.sflag [#allocation8], %s1258_s7  ;;  %s1054_s9 = scalar_lea.hbm %s1379_s1, 1024 }
  0x72   : > { %p1055_p9 = scmp.ne.s32.totalorder %s1379_s1, %s1054_s9  ;;  %s1059_s12 = scalar_lea.hbm %s1567_s3, 4096 }
  0x73   : > { %p1060_p3 = scmp.lt.u32.totalorder %s1379_s1, %s1567_s3  ;;  %p1061_p7 = scmp.lt.u32.totalorder %s1059_s12, %s1054_s9 }
  0x74   : > { %p1057_p6 = pnand %p1055_p9, %p1284_p13  ;;  %p1063_p4 = scmp.lt.u32.totalorder %s1054_s9, %s1379_s1 }
  0x75   : > { %p1062_p11 = por %p1061_p7, %p1060_p3 }
  0x76   : > { %p1058_p2 = pneg %p1057_p6 }
  0x77   : > { %p1064_p5 = por %p1063_p4, %p1062_p11 }
  0x79   : > { %p1065_p8 = pnand %p1064_p5, %p1058_p2 }
  0x7b   : > { %1068 = shalt.err (!%p1065_p8)
}
  0x7c   : > { %s1069_s14 = scalar_lea.vmem %s1381_s13, 1024  ;;  %s1165_s23 = smov [#allocation7]  }
  0x7d   : > { %p1070_p10 = scmp.ne.s32.totalorder %s1381_s13, %s1069_s14  ;;  %s1074_s6 = sshll.u32 %s1165_s23, 4  ;;  %s1075_s6 = int_to_ptr.vmem [resolvable:$false] %s1074_s6 }
  0x7e   : > { %s1076_s30 = scalar_lea.vmem %s1075_s6, 2048  ;;  %p1077_p9 = scmp.lt.s32.totalorder %s1381_s13, %s1075_s6 }
  0x7f   : > { %p1072_p1 = pnand %p1070_p10, %p1284_p13  ;;  %p1078_p6 = scmp.lt.s32.totalorder %s1076_s30, %s1069_s14 }
  0x81   : > { %p1073_p0 = pneg %p1072_p1  ;;  %p1079_p3 = por %p1078_p6, %p1077_p9 }
  0x83   : > { %p1080_p7 = pnand %p1079_p3, %p1073_p0 }
  0x85   : > { %1083 = shalt.err (!%p1080_p7)
}
  0x86   : > { %s1592_s25 = smov 8   ;;  %s1593_s9 = smov 128  }
  0x87   : > { %895 = dma.hbm_to_vmem [thread:$0]  (!%p1591_p12), %s1379_s1, 1024, %s1381_s13, %s264_s10, %s1593_s9, %s1593_s9, %s1592_s25  }
  0x88   : > { %p1594_p13 = scmp.ne.s32.totalorder %s1587_s26, 0 }
  0x89   : > { %s290_s27 = sand.u32 (!%p1594_p13), 1, %s1134_s16   ;;  %p1595_p2 = scmp.ne.s32.totalorder (!%p1594_p13), %s1582_s29, 0 }
  0x8a   : > { %288 = sbr.rel (%p1594_p13) target bundleno = 372 (0x174), region = 36  ;;  %s862_s28 = sshll.u32 (!%p1594_p13), %s290_s27, 3 }
  0x8b   : > { %s291_s5 = scalar_lea.sflag (!%p1594_p13), [#allocation3], %s290_s27  ;;  %s1413_s12 = scalar_lea.vmem (!%p1594_p13), [#allocation2], %s862_s28 }
  0x91   : > { %1117 = dma.done.wait (%p1595_p2), %s291_s5, 128  }
  0x92   : > { %1119 = vsyncadd (%p1595_p2), %s291_s5, 4294967168  ;;  %s1596_s7 = sadd.s32 4294967295, %s1158_s22   ;;  %s874_s1 = smul.u32 384, %s290_s27 }
  0x93   : > { %s299_s8 = sand.u32 1, %s1596_s7  }
  0x94   : > { %s300_s13 = scalar_lea.sflag [#allocation5], %s299_s8  ;;  %s1421_s26 = scalar_lea.vmem [#allocation4], %s874_s1 }
  0x95   : > { %1121 = dma.done.wait (%p1595_p2), %s300_s13, 6272  }
  0x96   : > { %1123 = vsyncadd (%p1595_p2), %s300_s13, 4294961024  ;;  %s864_s10 = sshll.u32 %s290_s27, 6  ;;  %s1427_s15 = scalar_lea.vmem [#allocation6], %s862_s28 }
  0x97   : > { %s318_s24 = scalar_lea.sflag [#allocation8], %s290_s27  ;;  %s321_s14 = scalar_lea.vmem [#allocation7], %s864_s10 }
  0x98   : > { %1125 = dma.done.wait (%p1595_p2), %s318_s24, 1024  }
  0x99   : > { %1127 = vsyncadd (%p1595_p2), %s318_s24, 4294966272  ;;  %p370_p12 = scmp.lt.s32.totalorder %s1146_s19, 1  ;;  %p866_p11 = scmp.ne.s32.totalorder %s1142_s18, 0 }
  0x9a   : > { %vm378_vm0 = vcmask (!%p866_p11), 7168   ;;  %v1166_v0 = vmov (!%p866_p11), 0.0  }
  0x9b   : > { %s371_s23 = scalar_select %p370_p12, %s1146_s19, 1 }
  0x9c   : > { %377 = sbr.rel (%p866_p11) target bundleno = 163 (0xa3), region = 56 }
  0x9d   : > { %s865_s6 = sshll.u32 %s371_s23, 3 }
  0x9e   : > { %s1438_s9 = scalar_lea.vmem %s1568_s4, %s865_s6 }
  0x9f   : > { %379 = vst.msk [vmem:[%s1438_s9] sm:$0xff] (!%p866_p11), %vm378_vm0, %v1166_v0 }
  0xa3 PF: > { %v592_v1 = vld [vmem:[%s321_s14] sm:$0xff]  ;;  %v593_v2 = vld [vmem:[%s321_s14 + $0x8] sm:$0xff]  ;;  %v594_v3 = vld [vmem:[%s321_s14 + $0x10] sm:$0xff]  ;;  %vm574_vm1 = vcmask 1041409   ;;  %vm576_vm2 = vcmask 1042434   ;;  %vm578_vm3 = vcmask 1043459  }
  0xa4   : > { %v595_v4 = vld [vmem:[%s321_s14 + $0x18] sm:$0xff]  ;;  %v596_v5 = vld [vmem:[%s321_s14 + $0x20] sm:$0xff]  ;;  %v597_v6 = vld [vmem:[%s321_s14 + $0x28] sm:$0xff]  ;;  %v600_v8 = vrot.slane %v592_v1, 4  ;;  %v606_v9 = vrot.slane %v593_v2, 4  ;;  %v612_v10 = vrot.slane %v594_v3, 4 }
  0xa5   : > { %v598_v7 = vld [vmem:[%s321_s14 + $0x30] sm:$0xff]  ;;  %v599_v11 = vld [vmem:[%s321_s14 + $0x38] sm:$0xff]  ;;  %v618_v12 = vrot.slane %v595_v4, 4  ;;  %v624_v13 = vrot.slane %v596_v5, 4  ;;  %v630_v14 = vrot.slane %v597_v6, 4  ;;  %vm580_vm4 = vcmask 1044484  }
  0xa6   : > { %v636_v15 = vrot.slane %v598_v7, 4  ;;  %v601_v16 = vadd.f32 %v600_v8, %v592_v1  ;;  %v607_v17 = vadd.f32 %v606_v9, %v593_v2  ;;  %v613_v18 = vadd.f32 %v612_v10, %v594_v3  ;;  %v382_v48 = vld [vmem:[%s1421_s26] sm:$0xff]  ;;  %v383_v49 = vld [vmem:[%s1421_s26 + $0x30] sm:$0xff]  ;;  %s867_s29 = sshll.u32 %s1146_s19, 1 }
  0xa7   : > { %v642_v19 = vrot.slane %v599_v11, 4  ;;  %v619_v20 = vadd.f32 %v618_v12, %v595_v4  ;;  %v625_v21 = vadd.f32 %v624_v13, %v596_v5  ;;  %v631_v22 = vadd.f32 %v630_v14, %v597_v6  ;;  %v384_v54 = vld [vmem:[%s1421_s26 + $0x60] sm:$0xff]  ;;  %v385_v55 = vld [vmem:[%s1421_s26 + $0x90] sm:$0xff]  ;;  %s673_s27 = sadd.s32 %s1142_s18, %s867_s29 }
  0xa8   : > { %v637_v23 = vadd.f32 %v636_v15, %v598_v7  ;;  %v602_v24 = vrot.slane %v601_v16, 2  ;;  %v608_v25 = vrot.slane %v607_v17, 2  ;;  %v614_v26 = vrot.slane %v613_v18, 2  ;;  %v386_v56 = vld [vmem:[%s1421_s26 + $0xc0] sm:$0xff]  ;;  %v387_v61 = vld [vmem:[%s1421_s26 + $0xf0] sm:$0xff]  ;;  %s868_s28 = sshll.u32 %s673_s27, 3 }
  0xa9   : > { %v643_v27 = vadd.f32 %v642_v19, %v599_v11  ;;  %vm582_vm5 = vcmask 1045509   ;;  %v620_v28 = vrot.slane %v619_v20, 2  ;;  %v626_v29 = vrot.slane %v625_v21, 2  ;;  %v381_v14 = vld [vmem:[%s1427_s15] sm:$0xff] }
  0xaa   : > { %v632_v30 = vrot.slane %v631_v22, 2  ;;  %v638_v31 = vrot.slane %v637_v23, 2  ;;  %vm584_vm6 = vcmask 1046534   ;;  %v603_v32 = vadd.f32 %v602_v24, %v601_v16 }
  0xab   : > { %v609_v33 = vadd.f32 %v608_v25, %v607_v17  ;;  %v615_v34 = vadd.f32 %v614_v26, %v613_v18  ;;  %v644_v35 = vrot.slane %v643_v27, 2  ;;  %vm586_vm7 = vcmask 1047559   ;;  %v389_v25 = vld [vmem:[%s1421_s26 + $0x150] sm:$0xff] }
  0xac   : > { %v621_v36 = vadd.f32 %v620_v28, %v619_v20  ;;  %v627_v37 = vadd.f32 %v626_v29, %v625_v21  ;;  %v633_v38 = vadd.f32 %v632_v30, %v631_v22  ;;  %v639_v39 = vadd.f32 %v638_v31, %v637_v23  ;;  %v388_v20 = vld [vmem:[%s1421_s26 + $0x120] sm:$0xff] }
  0xad   : > { %v604_v40 = vrot.slane %v603_v32, 1  ;;  %v610_v41 = vrot.slane %v609_v33, 1  ;;  %v616_v42 = vrot.slane %v615_v34, 1  ;;  %v645_v43 = vadd.f32 %v644_v35, %v643_v27 }
  0xae   : > { %v622_v44 = vrot.slane %v621_v36, 1  ;;  %v628_v45 = vrot.slane %v627_v37, 1  ;;  %v634_v46 = vrot.slane %v633_v38, 1  ;;  %v640_v47 = vrot.slane %v639_v39, 1 }
  0xaf   : > { %v605_v50 = vadd.f32 %v604_v40, %v603_v32  ;;  %v611_v51 = vadd.f32 %v610_v41, %v609_v33  ;;  %v617_v52 = vadd.f32 %v616_v42, %v615_v34  ;;  %v646_v53 = vrot.slane %v645_v43, 1  ;;  %v438_v33 = vld [vmem:[%s1421_s26 + $0x8] sm:$0xff]  ;;  %v444_v40 = vld [vmem:[%s1421_s26 + $0x40] sm:$0xff] }
  0xb0   : > { %v623_v57 = vadd.f32 %v622_v44, %v621_v36  ;;  %v629_v58 = vadd.f32 %v628_v45, %v627_v37  ;;  %v635_v59 = vadd.f32 %v634_v46, %v633_v38  ;;  %v641_v60 = vadd.f32 %v640_v47, %v639_v39  ;;  %v439_v38 = vld [vmem:[%s1421_s26 + $0x10] sm:$0xff]  ;;  %v443_v39 = vld [vmem:[%s1421_s26 + $0x38] sm:$0xff]  ;;  %v448_v45 = vld [vmem:[%s1421_s26 + $0x68] sm:$0xff] }
  0xb1   : > { %v647_v62 = vadd.f32 %v646_v53, %v645_v43  ;;  %v656_v63 = vsel %vm574_vm1, %v611_v51, %v605_v50  ;;  %v390_v0 = vrot.slane %v382_v48, 4  ;;  %v396_v1 = vrot.slane %v383_v49, 4  ;;  %v440_v44 = vld [vmem:[%s1421_s26 + $0x18] sm:$0xff]  ;;  %v449_v46 = vld [vmem:[%s1421_s26 + $0x70] sm:$0xff]  ;;  %v454_v51 = vld [vmem:[%s1421_s26 + $0xa0] sm:$0xff] }
  0xb2   : > { %v657_v2 = vsel %vm576_vm2, %v617_v52, %v656_v63  ;;  %v402_v3 = vrot.slane %v384_v54, 4  ;;  %v408_v4 = vrot.slane %v385_v55, 4  ;;  %v414_v5 = vrot.slane %v386_v56, 4  ;;  %v453_v47 = vld [vmem:[%s1421_s26 + $0x98] sm:$0xff]  ;;  %v458_v52 = vld [vmem:[%s1421_s26 + $0xc8] sm:$0xff]  ;;  %v459_v53 = vld [vmem:[%s1421_s26 + $0xd0] sm:$0xff] }
  0xb3   : > { %v658_v6 = vsel %vm578_vm3, %v623_v57, %v657_v2  ;;  %v391_v7 = vadd.f32 %v390_v0, %v382_v48  ;;  %v397_v8 = vadd.f32 %v396_v1, %v383_v49  ;;  %v420_v9 = vrot.slane %v387_v61, 4  ;;  %v450_v63 = vld [vmem:[%s1421_s26 + $0x78] sm:$0xff]  ;;  %v455_v0 = vld [vmem:[%s1421_s26 + $0xa8] sm:$0xff] }
  0xb4   : > { %v659_v10 = vsel %vm580_vm4, %v629_v58, %v658_v6  ;;  %v403_v11 = vadd.f32 %v402_v3, %v384_v54  ;;  %v409_v12 = vadd.f32 %v408_v4, %v385_v55  ;;  %v415_v13 = vadd.f32 %v414_v5, %v386_v56  ;;  %v445_v58 = vld [vmem:[%s1421_s26 + $0x48] sm:$0xff]  ;;  %v460_v1 = vld [vmem:[%s1421_s26 + $0xd8] sm:$0xff]  ;;  %v441_v5 = vld [vmem:[%s1421_s26 + $0x20] sm:$0xff] }
  0xb5   : > { %v660_v15 = vsel %vm582_vm5, %v635_v59, %v659_v10  ;;  %v392_v16 = vrot.slane %v391_v7, 2  ;;  %v398_v17 = vrot.slane %v397_v8, 2  ;;  %v421_v18 = vadd.f32 %v420_v9, %v387_v61  ;;  %v463_v59 = vld [vmem:[%s1421_s26 + $0xf8] sm:$0xff]  ;;  %v446_v6 = vld [vmem:[%s1421_s26 + $0x50] sm:$0xff] }
  0xb6   : > { %v661_v19 = vsel %vm584_vm6, %v641_v60, %v660_v15  ;;  %v404_v21 = vrot.slane %v403_v11, 2  ;;  %v410_v22 = vrot.slane %v409_v12, 2  ;;  %v416_v23 = vrot.slane %v415_v13, 2  ;;  %v464_v60 = vld [vmem:[%s1421_s26 + $0x100] sm:$0xff] }
  0xb7   : > { %v662_v24 = vsel %vm586_vm7, %v647_v62, %v661_v19  ;;  %v393_v26 = vadd.f32 %v392_v16, %v391_v7  ;;  %v399_v27 = vadd.f32 %v398_v17, %v397_v8  ;;  %v422_v28 = vrot.slane %v421_v18, 2  ;;  %v465_v7 = vld [vmem:[%s1421_s26 + $0x108] sm:$0xff] }
  0xb8   : > { %v664_v29 = vmul.f32 %v662_v24, %v381_v14  ;;  %v405_v30 = vadd.f32 %v404_v21, %v403_v11  ;;  %v411_v31 = vadd.f32 %v410_v22, %v409_v12  ;;  %v417_v32 = vadd.f32 %v416_v23, %v415_v13  ;;  %v451_v12 = vld [vmem:[%s1421_s26 + $0x80] sm:$0xff]  ;;  %v456_v13 = vld [vmem:[%s1421_s26 + $0xb0] sm:$0xff]  ;;  %v442_v19 = vld [vmem:[%s1421_s26 + $0x28] sm:$0xff] }
  0xb9   : > { %v394_v34 = vrot.slane %v393_v26, 1  ;;  %v400_v35 = vrot.slane %v399_v27, 1  ;;  %v423_v36 = vadd.f32 %v422_v28, %v421_v18  ;;  %v426_v37 = vrot.slane %v388_v20, 4  ;;  %v461_v14 = vld [vmem:[%s1421_s26 + $0xe0] sm:$0xff]  ;;  %v466_v21 = vld [vmem:[%s1421_s26 + $0x110] sm:$0xff]  ;;  %v462_v28 = vld [vmem:[%s1421_s26 + $0xe8] sm:$0xff] }
  0xba   : > { %665 = vadd.xlane.f32.xlu0 %v664_v29  ;;  %v406_v41 = vrot.slane %v405_v30, 1  ;;  %v412_v42 = vrot.slane %v411_v31, 1  ;;  %v432_v43 = vrot.slane %v389_v25, 4  ;;  %v418_v49 = vrot.slane %v417_v32, 1 }
  0xbb   : > { %v1466_v48 = vadd.f32 %v394_v34, %v393_v26  ;;  %v427_v50 = vadd.f32 %v426_v37, %v388_v20  ;;  %v1471_v54 = vadd.f32 %v400_v35, %v399_v27  ;;  %v424_v56 = vrot.slane %v423_v36, 1  ;;  %v447_v20 = vld [vmem:[%s1421_s26 + $0x58] sm:$0xff]  ;;  %v452_v26 = vld [vmem:[%s1421_s26 + $0x88] sm:$0xff]  ;;  %v469_v37 = vld [vmem:[%s1421_s26 + $0x130] sm:$0xff] }
  0xbc   : > { %v1473_v55 = vadd.f32 %v406_v41, %v405_v30  ;;  %v433_v57 = vadd.f32 %v432_v43, %v389_v25  ;;  %v1478_v61 = vadd.f32 %v412_v42, %v411_v31  ;;  %v478_v2 = vadd.f32 %v439_v38, %v438_v33  ;;  %v457_v27 = vld [vmem:[%s1421_s26 + $0xb8] sm:$0xff]  ;;  %v468_v35 = vld [vmem:[%s1421_s26 + $0x128] sm:$0xff]  ;;  %v474_v42 = vld [vmem:[%s1421_s26 + $0x160] sm:$0xff] }
  0xbd   : > { %v428_v62 = vrot.slane %v427_v50, 2  ;;  %v488_v3 = vadd.f32 %v444_v40, %v443_v39  ;;  %v498_v8 = vadd.f32 %v449_v46, %v448_v45  ;;  %v508_v9 = vadd.f32 %v454_v51, %v453_v47  ;;  %v467_v34 = vld [vmem:[%s1421_s26 + $0x118] sm:$0xff]  ;;  %v475_v51 = vld [vmem:[%s1421_s26 + $0x168] sm:$0xff] }
  0xbe   : > { %v434_v4 = vrot.slane %v433_v57, 2  ;;  %v518_v10 = vadd.f32 %v459_v53, %v458_v52  ;;  %v479_v15 = vadd.f32 %v478_v2, %v440_v44  ;;  %v528_v17 = vadd.f32 %v464_v60, %v463_v59  ;;  %v473_v41 = vld [vmem:[%s1421_s26 + $0x158] sm:$0xff] }
  0xbf   : > { %v1486_v11 = vadd.f32 %v428_v62, %v427_v50  ;;  %v489_v16 = vadd.f32 %v488_v3, %v445_v58  ;;  %v499_v22 = vadd.f32 %v498_v8, %v450_v63  ;;  %v509_v23 = vadd.f32 %v508_v9, %v455_v0  ;;  %v471_v58 = vld [vmem:[%s1421_s26 + $0x140] sm:$0xff]  ;;  %v476_v0 = vld [vmem:[%s1421_s26 + $0x170] sm:$0xff] }
  0xc0   : > { %v1491_v18 = vadd.f32 %v434_v4, %v433_v57  ;;  %v519_v24 = vadd.f32 %v518_v10, %v460_v1  ;;  %v1496_v25 = vadd.f32 %v418_v49, %v417_v32  ;;  %v480_v29 = vadd.f32 %v479_v15, %v441_v5  ;;  %v472_v5 = vld [vmem:[%s1421_s26 + $0x148] sm:$0xff]  ;;  %v477_v10 = vld [vmem:[%s1421_s26 + $0x178] sm:$0xff] }
  0xc1   : > { %v490_v30 = vadd.f32 %v489_v16, %v446_v6  ;;  %v529_v31 = vadd.f32 %v528_v17, %v465_v7  ;;  %v1501_v33 = vadd.f32 %v424_v56, %v423_v36  ;;  %v500_v38 = vadd.f32 %v499_v22, %v451_v12  ;;  %v470_v36 = vld [vmem:[%s1421_s26 + $0x138] sm:$0xff] }
  0xc2   : > { %v510_v39 = vadd.f32 %v509_v23, %v456_v13  ;;  %v520_v40 = vadd.f32 %v519_v24, %v461_v14  ;;  %v430_v32 = vrot.slane %v1486_v11, 1  ;;  %v481_v43 = vadd.f32 %v480_v29, %v442_v19 }
  0xc3   : > { %v491_v44 = vadd.f32 %v490_v30, %v447_v20  ;;  %v530_v45 = vadd.f32 %v529_v31, %v466_v21  ;;  %v436_v46 = vrot.slane %v1491_v18, 1  ;;  %v501_v47 = vadd.f32 %v500_v38, %v452_v26 }
  0xc4   : > { %v511_v49 = vadd.f32 %v510_v39, %v457_v27  ;;  %v521_v50 = vadd.f32 %v520_v40, %v462_v28  ;;  %v482_v52 = vrot.slane %v481_v43, 4  ;;  %v538_v57 = vadd.f32 %v469_v37, %v468_v35 }
  0xc5   : > { %v492_v53 = vrot.slane %v491_v44, 4  ;;  %v531_v56 = vadd.f32 %v530_v45, %v467_v34  ;;  %v502_v59 = vrot.slane %v501_v47, 4  ;;  %v548_v63 = vadd.f32 %v474_v42, %v473_v41 }
  0xc6   : > { %v512_v60 = vrot.slane %v511_v49, 4  ;;  %v522_v62 = vrot.slane %v521_v50, 4  ;;  %v483_v1 = vadd.f32 %v482_v52, %v481_v43  ;;  %v539_v4 = vadd.f32 %v538_v57, %v470_v36 }
  0xc7   : > { %v493_v2 = vadd.f32 %v492_v53, %v491_v44  ;;  %v532_v3 = vrot.slane %v531_v56, 4  ;;  %v503_v6 = vadd.f32 %v502_v59, %v501_v47  ;;  %v549_v9 = vadd.f32 %v548_v63, %v475_v51 }
  0xc8   : > { %v513_v7 = vadd.f32 %v512_v60, %v511_v49  ;;  %v523_v8 = vadd.f32 %v522_v62, %v521_v50  ;;  %v484_v12 = vrot.slane %v483_v1, 2  ;;  %v540_v15 = vadd.f32 %v539_v4, %v471_v58 }
  0xc9   : > { %v494_v13 = vrot.slane %v493_v2, 2  ;;  %v533_v14 = vadd.f32 %v532_v3, %v531_v56  ;;  %v504_v16 = vrot.slane %v503_v6, 2  ;;  %v550_v20 = vadd.f32 %v549_v9, %v476_v0 }
  0xca   : > { %v514_v17 = vrot.slane %v513_v7, 2  ;;  %v524_v19 = vrot.slane %v523_v8, 2  ;;  %v485_v21 = vadd.f32 %v484_v12, %v483_v1  ;;  %v541_v24 = vadd.f32 %v540_v15, %v472_v5 }
  0xcb   : > { %v495_v22 = vadd.f32 %v494_v13, %v493_v2  ;;  %v534_v23 = vrot.slane %v533_v14, 2  ;;  %v505_v26 = vadd.f32 %v504_v16, %v503_v6  ;;  %v551_v29 = vadd.f32 %v550_v20, %v477_v10  ;;  %v380_v6 = vld [vmem:[%s1413_s12] sm:$0xff]  ;;  %v681_v20 = vld [vmem:[%s1438_s9] sm:$0xff] }
  0xcc   : > { %v515_v27 = vadd.f32 %v514_v17, %v513_v7  ;;  %v525_v28 = vadd.f32 %v524_v19, %v523_v8  ;;  %v486_v30 = vrot.slane %v485_v21, 1  ;;  %v542_v35 = vrot.slane %v541_v24, 4 }
  0xcd   : > { %v496_v31 = vrot.slane %v495_v22, 1  ;;  %v535_v34 = vadd.f32 %v534_v23, %v533_v14  ;;  %v506_v37 = vrot.slane %v505_v26, 1  ;;  %v552_v40 = vrot.slane %v551_v29, 4 }
  0xce   : > { %v516_v38 = vrot.slane %v515_v27, 1  ;;  %v526_v39 = vrot.slane %v525_v28, 1  ;;  %v487_v41 = vadd.f32 %v486_v30, %v485_v21  ;;  %v543_v44 = vadd.f32 %v542_v35, %v541_v24 }
  0xcf   : > { %v497_v42 = vadd.f32 %v496_v31, %v495_v22  ;;  %v536_v43 = vrot.slane %v535_v34, 1  ;;  %v507_v45 = vadd.f32 %v506_v37, %v505_v26  ;;  %v553_v49 = vadd.f32 %v552_v40, %v551_v29 }
  0xd0   : > { %v517_v36 = vadd.f32 %v516_v38, %v515_v27  ;;  %v527_v47 = vadd.f32 %v526_v39, %v525_v28  ;;  %v544_v51 = vrot.slane %v543_v44, 2  ;;  %v558_v52 = vsub.f32 %v1466_v48, %v487_v41 }
  0xd1   : > { %v537_v50 = vadd.f32 %v536_v43, %v535_v34  ;;  %v559_v53 = vsub.f32 %v1471_v54, %v497_v42  ;;  %v554_v56 = vrot.slane %v553_v49, 2  ;;  %v560_v57 = vsub.f32 %v1473_v55, %v507_v45 }
  0xd2   : > { %v561_v58 = vsub.f32 %v1478_v61, %v517_v36  ;;  %v562_v59 = vsub.f32 %v1496_v25, %v527_v47  ;;  %v545_v60 = vadd.f32 %v544_v51, %v543_v44  ;;  %v431_v48 = vadd.f32 %v430_v32, %v1486_v11 }
  0xd3   : > { %v575_v62 = vsel %vm574_vm1, %v559_v53, %v558_v52  ;;  %v555_v63 = vadd.f32 %v554_v56, %v553_v49  ;;  %v563_v0 = vsub.f32 %v1501_v33, %v537_v50  ;;  %v437_v61 = vadd.f32 %v436_v46, %v1491_v18 }
  0xd4   : > { %v577_v1 = vsel %vm576_vm2, %v560_v57, %v575_v62  ;;  %v546_v54 = vrot.slane %v545_v60, 1  ;;  %v675_v46 = vlaneseq  ;;  %v677_v12 = vstv %s868_s28 }
  0xd5   : > { %v579_v55 = vsel %vm578_vm3, %v561_v58, %v577_v1  ;;  %v556_v25 = vrot.slane %v555_v63, 1  ;;  %vm683_vm9 = vcmask 7168  }
  0xd6   : > { %v581_v2 = vsel %vm580_vm4, %v562_v59, %v579_v55  ;;  %v547_v3 = vadd.f32 %v546_v54, %v545_v60  ;;  %v676_v10 = vshrl.u32 %v675_v46, 7 }
  0xd7   : > { %v557_v33 = vadd.f32 %v556_v25, %v555_v63  ;;  %v583_v4 = vsel %vm582_vm5, %v563_v0, %v581_v2 }
  0xd8   : > { %v564_v5 = vsub.f32 %v431_v48, %v547_v3  ;;  %v678_v14 = vadd.s32 %v677_v12, %v676_v10 }
  0xd9   : > { %v565_v7 = vsub.f32 %v437_v61, %v557_v33 }
  0xda   : > { %v585_v11 = vsel %vm584_vm6, %v564_v5, %v583_v4  ;;  %vm679_vm8 = vcmp.lt.s32.totalorder %v678_v14, 20 }
  0xdb   : > { %v587_v32 = vsel %vm586_vm7, %v565_v7, %v585_v11 }
  0xdc   : > { %v589_v8 = vmul.f32 %v587_v32, %v380_v6 }
  0xde   : > { %590 = vadd.xlane.f32.xlu0 %v589_v8 }
 0x147   : > { %v666_v18 = vpop.xlane.xlu0 %665 }
 0x148   : > { %v667_v9 = vmul.f32 0.125, %v666_v18 }
 0x14a   : > { %v669_v13 = vmul.f32 0.5, %v667_v9 }
 0x14c   : > { %v670_v17 = vmul.f32 %v669_v13, %v667_v9 }
 0x16b   : > { %v591_v15 = vpop.xlane.xlu0 %590 }
 0x16c   : > { %v668_v16 = vmul.f32 0.125, %v591_v15 }
 0x16e   : > { %v671_v19 = vsub.f32 %v668_v16, %v670_v17 }
 0x170   : > { %v680_v21 = vsel %vm679_vm8, %v671_v19, 0.0 }
 0x171   : > { %v682_v22 = vadd.f32 %v681_v20, %v680_v21 }
 0x173   : > { %684 = vst.msk [vmem:[%s1438_s9] sm:$0xff] %vm683_vm9, %v682_v22 }
 0x174 PF: > { %s23_s22 = sadd.s32 1, %s1158_s22   ;;  %s1597_s5 = sld [smem:[#allocation12_spill]] }
 0x175   : > { %p20_p4 = scmp.ge.s32.totalorder %s23_s22, 6   ;;  %s1598_s12 = sld [smem:[#allocation13_spill]] }
 0x176   : > { %s1599_s15 = smov %s1134_s16  ;;  %s1600_s16 = smov %s1138_s17 }
 0x177   : > { %s1601_s17 = smov %s1267_s11  ;;  %s1602_s18 = smov %s1150_s20 }
 0x178   : > { %s1603_s19 = smov %s1154_s21  ;;  %22 = sbr.rel (!%p20_p4) target bundleno = 11 (0xb), region = 117 }
 0x17a   : > { %s1604_s20 = smov %s1597_s5 }
 0x17b   : > { %s1605_s21 = smov %s1598_s12 }
 0x17f   :  { %704 = vsyncpa [#allocation3], 1 }
 0x180   :  { %706 = vsyncpa [#allocation3 + $0x1], 1 }
 0x181   :  { %707 = vsyncpa [#allocation5], 1 }
 0x182   :  { %709 = vsyncpa [#allocation5 + $0x1], 1 }
 0x183   :  { %710 = vsyncpa [#allocation8], 1 }
 0x184   :  { %712 = vsyncpa [#allocation8 + $0x1], 1 }

</bundles_post_ra>
